<compile_context>
chip_gen: v7x
topology: tpu7x:2x2x1
jax: 0.10.0
libtpu: 0.0.40
codegen_flags: <defaults>
</compile_context>

<pallas_src>
import functools

import jax
import jax.numpy as jnp
from jax.experimental import pallas as pl
from jax.experimental.pallas import tpu as pltpu


def _temp_power_norm_kernel(x_ref, o_ref, *, alpha, inv_temp, eps):
    # Block: (1, C, T_HW) — one batch element, all channels, one spatial tile.
    x = x_ref[...].astype(jnp.float32)

    # relu(x / T) + eps  (temperature folded to a compile-time multiply)
    x = jnp.maximum(x * jnp.float32(inv_temp), 0.0) + jnp.float32(eps)
    # After relu+eps we already have x >= eps, so only the upper clamp matters.
    x = jnp.minimum(x, jnp.float32(1.0e6))

    # x ** alpha — specialize at trace time (alpha is a Python float).
    if alpha == 1.0:
        pass
    elif alpha == 0.5:
        x = jnp.sqrt(x)
    elif alpha == 2.0:
        x = x * x
    else:
        # x > 0 guaranteed; exp/log go through the EUP slot.
        x = jnp.exp(jnp.float32(alpha) * jnp.log(x))

    # Channel-axis reduction (dim=1 of NCHW) per spatial position (per lane).
    denom = jnp.sum(x, axis=1, keepdims=True) + jnp.float32(eps)
    # One reciprocal per (1,1,T_HW) row + broadcast multiply instead of a
    # full-tile divide.
    inv = pl.reciprocal(denom, approx=False)
    o_ref[...] = (x * inv).astype(o_ref.dtype)


def _pick_tile_hw(hw, c, itemsize):
    """Pick a lane-dense spatial tile that keeps 4 double-buffered blocks
    (2 in + 2 out) comfortably under the default scoped-VMEM limit on
    v5e (16 MiB) / v6e (32 MiB) / v7x (32 MiB)."""
    budget_bytes = 8 * 1024 * 1024           # ~8 MiB across the 4 buffers
    budget_elems = budget_bytes // (4 * max(itemsize, 1))
    max_t = max(128, ((budget_elems // max(c, 1)) // 128) * 128)
    max_t = min(max_t, 2048)                  # large lane-dense tile cap

    if hw <= max_t:
        return hw                             # full spatial row (always legal)

    # Prefer a multiple of 128 that divides HW exactly (no padded last tile).
    for t in range(max_t, 127, -128):
        if hw % t == 0:
            return t
    # Fall back to a padded last tile; padded lanes are independent and their
    # (garbage) results are dropped on writeback.
    return max_t


def temperature_power_norm(x, alpha=0.5, temperature=1.0, eps=1e-6):
    """x: (N, C, H, W) NCHW float array."""
    N, C, H, W = x.shape
    HW = H * W
    x3 = x.reshape(N, C, HW)

    t_hw = _pick_tile_hw(HW, C, x.dtype.itemsize)

    kernel = functools.partial(
        _temp_power_norm_kernel,
        alpha=float(alpha),
        inv_temp=1.0 / float(temperature),
        eps=float(eps),
    )

    out3 = pl.pallas_call(
        kernel,
        out_shape=jax.ShapeDtypeStruct((N, C, HW), x.dtype),
        grid=(N, pl.cdiv(HW, t_hw)),
        in_specs=[pl.BlockSpec((1, C, t_hw), lambda n, s: (n, 0, s))],
        out_specs=pl.BlockSpec((1, C, t_hw), lambda n, s: (n, 0, s)),
        compiler_params=pltpu.CompilerParams(
            # Both axes are independent (channel reduction is inside a block),
            # so both TensorCores (v7x) / megacore can shard the grid.
            dimension_semantics=("parallel", "parallel"),
        ),
    )(x3)

    return out3.reshape(N, C, H, W)


def _reference(x, alpha=0.5, temperature=1.0, eps=1e-6):
    x = jnp.maximum(x / temperature, 0.0) + eps
    x = jnp.clip(x, eps, 1.0e6)
    x = jnp.power(x, alpha)
    return x / (jnp.sum(x, axis=1, keepdims=True) + eps)


if __name__ == "__main__":
    key = jax.random.PRNGKey(0)
    # Small NCHW input consistent with a conv feature map.
    x = jax.random.normal(key, (2, 4, 16, 16), dtype=jnp.float32)

    out = temperature_power_norm(x, alpha=0.5, temperature=1.0, eps=1e-6)
    out = jax.block_until_ready(out)

    ref = _reference(x, alpha=0.5, temperature=1.0, eps=1e-6)
    assert out.shape == x.shape
    assert jnp.allclose(out, ref, atol=1e-5, rtol=1e-5), (
        float(jnp.max(jnp.abs(out - ref)))
    )

    print("KERNEL_OK")
</pallas_src>

<mosaic_0001>
module attributes {stable_mosaic.version = 11 : i64} {
  func.func @_temp_power_norm_kernel(%arg0: i32, %arg1: i32, %arg2: memref<1x4x256xf32, #tpu.memory_space<vmem>>, %arg3: memref<1x4x256xf32, #tpu.memory_space<vmem>>) attributes {dimension_semantics = [#tpu.dimension_semantics<parallel>, #tpu.dimension_semantics<parallel>], iteration_bounds = array<i64: 2, 1>, scalar_prefetch = 0 : i64, scratch_operands = 0 : i64, tpu.core_type = #tpu.core_type<tc>, window_params = [{transform_indices = @transform_0, window_bounds = array<i64: 1, 4, 256>}, {transform_indices = @transform_1, window_bounds = array<i64: 1, 4, 256>}]} {
    %c0 = arith.constant 0 : index
    %c0_0 = arith.constant 0 : index
    %c0_1 = arith.constant 0 : index
    %0 = vector.load %arg2[%c0, %c0_0, %c0_1] : memref<1x4x256xf32, #tpu.memory_space<vmem>>, vector<1x4x256xf32>
    %cst = arith.constant 1.000000e+00 : f32
    %1 = vector.broadcast %cst : f32 to vector<1x4x256xf32>
    %2 = arith.mulf %0, %1 : vector<1x4x256xf32>
    %cst_2 = arith.constant 0.000000e+00 : f32
    %3 = vector.broadcast %cst_2 : f32 to vector<1x4x256xf32>
    %4 = arith.maximumf %2, %3 : vector<1x4x256xf32>
    %cst_3 = arith.constant 9.99999997E-7 : f32
    %5 = vector.broadcast %cst_3 : f32 to vector<1x4x256xf32>
    %6 = arith.addf %4, %5 : vector<1x4x256xf32>
    %cst_4 = arith.constant 1.000000e+06 : f32
    %7 = vector.broadcast %cst_4 : f32 to vector<1x4x256xf32>
    %8 = arith.minimumf %6, %7 : vector<1x4x256xf32>
    %9 = math.sqrt %8 : vector<1x4x256xf32>
    %cst_5 = arith.constant dense<0.000000e+00> : vector<1x256xf32>
    %10 = vector.multi_reduction <add>, %9, %cst_5 [1] : vector<1x4x256xf32> to vector<1x256xf32>
    %11 = vector.shape_cast %10 : vector<1x256xf32> to vector<1x1x256xf32>
    %cst_6 = arith.constant 9.99999997E-7 : f32
    %12 = vector.broadcast %cst_6 : f32 to vector<1x1x256xf32>
    %13 = arith.addf %11, %12 : vector<1x1x256xf32>
    %14 = tpu.reciprocal %13 : vector<1x1x256xf32> -> vector<1x1x256xf32>
    %15 = vector.broadcast %14 : vector<1x1x256xf32> to vector<1x4x256xf32>
    %16 = arith.mulf %9, %15 : vector<1x4x256xf32>
    %c0_7 = arith.constant 0 : index
    %c0_8 = arith.constant 0 : index
    %c0_9 = arith.constant 0 : index
    %17 = vector.load %arg3[%c0_7, %c0_8, %c0_9] : memref<1x4x256xf32, #tpu.memory_space<vmem>>, vector<1x4x256xf32>
    tpu.vector_store %arg3[%c0_7, %c0_8, %c0_9], %16 {strides = array<i32>} : memref<1x4x256xf32, #tpu.memory_space<vmem>>, vector<1x4x256xf32>,
    return
  }
  func.func @transform_0(%arg0: i32, %arg1: i32) -> (i32, i32, i32) {
    %c0_i32 = arith.constant 0 : i32
    %c0_i32_0 = arith.constant 0 : i32
    return %arg0, %c0_i32, %arg1 : i32, i32, i32
  }
  func.func @transform_1(%arg0: i32, %arg1: i32) -> (i32, i32, i32) {
    %c0_i32 = arith.constant 0 : i32
    %c0_i32_0 = arith.constant 0 : i32
    return %arg0, %c0_i32, %arg1 : i32, i32, i32
  }
}

</mosaic_0001>

<bundles_post_ra>
// kernel: tpu_custom_call.1
= control target key start
LH: loop header
LB: loop body
LE: loop exit
PB: predicated region body
PF: predicated region fallthrough
CT: control target
= control target key end

     0   :  { %6 = vsyncpa [#allocation3], 0  ;;  %s680_s0 = inlined_call_operand.hbm [shape: f32[2,4,256], index: 0, kind: input, shape index: {}]   ;;  %s681_s1 = inlined_call_operand.hbm [shape: f32[2,4,256], index: 1, kind: output, shape index: {}]  }
   0x1   :  { %8 = vsyncpa [#allocation3 + $0x1], 0 }
   0x2   :  { %9 = vsyncpa [#allocation4], 0 }
   0x3   :  { %11 = vsyncpa [#allocation4 + $0x1], 0  ;;  %s504_s6 = smov 0   ;;  %s506_s7 = smov 0  }
   0x4   :  { %s508_s8 = smov 0   ;;  %s510_s9 = smov 0  }
   0x5   :  { %s512_s10 = smov 0   ;;  %s514_s11 = smov 0  }
   0x6 LB: > { %s293_s12 = sadd.s32 4294967295, %s490_s11   ;;  %s294_s13 = sadd.s32 4294967294, %s490_s11   ;;  %s490_s11 = sphi %s514_s11, %s17_s11   ;;  %s486_s10 = sphi %s512_s10, %s697_s10   ;;  %s482_s9 = sphi %s510_s9, %s696_s9   ;;  %s478_s8 = sphi %s508_s8, %s695_s8   ;;  %s474_s7 = sphi %s506_s7, %s694_s7   ;;  %s470_s6 = sphi %s504_s6, %s693_s6  }
   0x7   : > { %s29_s14 = sadd.s32 1, %s486_s10  ;;  %s38_s15 = sadd.s32 1, %s478_s8 }
   0x8   : > { %p31_p0 = scmp.ge.s32.totalorder %s29_s14, 2  ;;  %p45_p1 = scmp.ne.s32.totalorder %s478_s8, %s474_s7 }
   0x9   : > { %p46_p2 = scmp.eq.s32.totalorder %s490_s11, 0  ;;  %p51_p3 = scmp.ne.s32.totalorder %s474_s7, %s470_s6 }
   0xa   : > { %s699_s14 = smov (%p31_p0, %s29_s14), 0  ;;  %p52_p5 = scmp.eq.s32.totalorder %s293_s12, 0 }
   0xb   : > { %p545_p4 = por %p46_p2, %p45_p1  ;;  %s33_s17 = ssub.s32 %s486_s10, %s699_s14 }
   0xc   : > { %p77_p6 = scmp.eq.s32.totalorder %s293_s12, 1  ;;  %p36_p7 = scmp.eq.s32.totalorder %s33_s17, 0 }
   0xd   : > { %p551_p8 = por %p52_p5, %p51_p3  ;;  %p83_p10 = scmp.eq.s32.totalorder %s294_s13, 1 }
   0xe   : > { %p555_p9 = por %p77_p6, %p45_p1  ;;  %p322_p13 = scmp.lt.s32.totalorder %s490_s11, 2 }
   0xf   : > { %s560_s20 = scalar_select %p36_p7, %s478_s8, %s38_s15  }
  0x10   : > { %s685_s19 = scalar_select %p555_p9, 1, 0 }
  0x11   : > { %p562_p11 = por %p83_p10, %p51_p3  ;;  %s103_s22 = sand.u32 1, %s478_s8  }
  0x12   : > { %s297_s23 = sshll.u32 %s103_s22, 3  ;;  %s308_s24 = sshll.u32 %s486_s10, 7 }
  0x13   : > { %s686_s21 = scalar_select %p562_p11, 1, 0 }
  0x14   : > { %s573_s27 = scalar_lea.hbm %s680_s0, %s308_s24  ;;  %s107_s28 = scalar_lea.vmem [#allocation2], %s297_s23 }
  0x15   : > { %s117_s29 = sshll.u32 %s107_s28, 4  ;;  %p579_p0 = pnand %p322_p13, %p545_p4  ;;  %s575_s29 = int_to_ptr.vmem [resolvable:$true] %s117_s29 }
  0x16   : > { %s104_s2 = scalar_lea.sflag [#allocation3], %s103_s22  ;;  %s378_s3 = scalar_lea.hbm %s573_s27, 128 }
  0x17   : > { %p379_p3 = scmp.ne.s32.totalorder %s573_s27, %s378_s3  ;;  %p380_p5 = pneg %p579_p0 }
  0x18   : > { %s383_s12 = scalar_lea.hbm %s680_s0, 256  ;;  %p384_p4 = scmp.lt.u32.totalorder %s573_s27, %s680_s0 }
  0x19   : > { %p381_p6 = pnand %p380_p5, %p379_p3  ;;  %p385_p10 = scmp.lt.u32.totalorder %s383_s12, %s378_s3 }
  0x1a   : > { %p387_p12 = scmp.lt.u32.totalorder %s378_s3, %s573_s27 }
  0x1b   : > { %p382_p7 = pneg %p381_p6  ;;  %p386_p13 = por %p385_p10, %p384_p4 }
  0x1d   : > { %p388_p1 = por %p387_p12, %p386_p13 }
  0x1f   : > { %p389_p2 = pnand %p388_p1, %p382_p7 }
  0x21   : > { %392 = shalt.err (!%p389_p2)
}
  0x22   : > { %s393_s16 = scalar_lea.vmem %s575_s29, 128  ;;  %s492_s17 = smov [#allocation2]  }
  0x23   : > { %p394_p3 = scmp.ne.s32.totalorder %s575_s29, %s393_s16  ;;  %s398_s22 = sshll.u32 %s492_s17, 4  ;;  %s399_s22 = int_to_ptr.vmem [resolvable:$false] %s398_s22 }
  0x24   : > { %s400_s23 = scalar_lea.vmem %s399_s22, 256  ;;  %p401_p9 = scmp.lt.s32.totalorder %s575_s29, %s399_s22 }
  0x25   : > { %p396_p6 = pnand %p394_p3, %p380_p5  ;;  %p402_p4 = scmp.lt.s32.totalorder %s400_s23, %s393_s16 }
  0x27   : > { %p397_p11 = pneg %p396_p6  ;;  %p403_p10 = por %p402_p4, %p401_p9 }
  0x29   : > { %p404_p12 = pnand %p403_p10, %p397_p11 }
  0x2b   : > { %407 = shalt.err (!%p404_p12)
}
  0x2c   : > { %317 = dma.hbm_to_vmem [thread:$0]  (!%p579_p0), %s573_s27, 128, %s575_s29, %s104_s2  }
  0x2d   : > { %p688_p1 = scmp.lt.s32.totalorder %s490_s11, 3  ;;  %p689_p2 = scmp.ge.s32.totalorder %s490_s11, 1 }
  0x2f   : > { %p123_p5 = pnand %p689_p2, %p688_p1 }
  0x30   : > { %s615_s24 = sand.u32 (!%p123_p5), 1, %s474_s7  }
  0x31   : > { %126 = sbr.rel (%p123_p5) target bundleno = 125 (0x7d), region = 24  ;;  %s301_s25 = sshll.u32 (!%p123_p5), %s615_s24, 3 }
  0x32   : > { %s129_s26 = scalar_lea.sflag (!%p123_p5), [#allocation3], %s615_s24  ;;  %s132_s28 = scalar_lea.vmem (!%p123_p5), [#allocation2], %s301_s25 }
  0x38   : > { %461 = dma.done.wait (%p551_p8), %s129_s26, 128  }
  0x39   : > { %463 = vsyncadd (%p551_p8), %s129_s26, 4294967168  ;;  %v153_v0 = vld [vmem:[%s132_s28] sm:$0xff]  ;;  %vm167_vm2 = vcmask 1043456   ;;  %s150_s18 = scalar_lea.vmem [#allocation5], %s301_s25  ;;  %s309_s29 = sshll.u32 %s482_s9, 7 }
  0x3a   : > { %v154_v1 = vmax.f32 %v153_v0, 0.0  ;;  %s209_s27 = sshll.u32 %s150_s18, 4  ;;  %s633_s3 = scalar_lea.hbm %s681_s1, %s309_s29  ;;  %s628_s27 = int_to_ptr.vmem [resolvable:$true] %s209_s27 }
  0x3b   : > { %s193_s4 = scalar_lea.sflag [#allocation4], %s615_s24  ;;  %s408_s5 = scalar_lea.vmem %s628_s27, 128 }
  0x3c   : > { %v155_v2 = vadd.f32 1e-06, %v154_v1  ;;  %p409_p8 = scmp.ne.s32.totalorder %s628_s27, %s408_s5  ;;  %p690_p9 = scmp.ne.s32.totalorder %s685_s19, 0 }
  0x3d   : > { %s493_s9 = smov [#allocation5]  }
  0x3e   : > { %v156_v3 = vmin.f32 %v155_v2, 1000000.0  ;;  %p410_p11 = pnand %p409_p8, %p690_p9  ;;  %s412_s12 = sshll.u32 %s493_s9, 4  ;;  %s413_s12 = int_to_ptr.vmem [resolvable:$false] %s412_s12 }
  0x3f   : > { %s414_s13 = scalar_lea.vmem %s413_s12, 256  ;;  %p415_p7 = scmp.lt.s32.totalorder %s628_s27, %s413_s12 }
  0x40   : > { %372 = vrsqrt.f32 %v156_v3  ;;  %vm159_vm0 = vcmp.eq.f32.partialorder %v156_v3, inf  ;;  %v162_v5 = vand.u32 2147483648, %v156_v3  ;;  %vm161_vm1 = vcmp.eq.f32.partialorder %v156_v3, 0.0  ;;  %p411_p0 = pneg %p410_p11  ;;  %p416_p13 = scmp.lt.s32.totalorder %s414_s13, %s408_s5 }
  0x42   : > { %p417_p3 = por %p416_p13, %p415_p7 }
  0x44   : > { %p418_p6 = pnand %p417_p3, %p411_p0 }
  0x4a   : > { %v373_v4 = vpop.eup %372 }
  0x4b   : > { %v158_v6 = vmul.f32 %v373_v4, %v156_v3 }
  0x4d   : > { %v160_v7 = vsel %vm159_vm0, %v156_v3, %v158_v6 }
  0x4e   : > { %v163_v8 = vsel %vm161_vm1, %v162_v5, %v160_v7 }
  0x4f   : > { %v165_v9 = vcombine.high %v163_v8, %v163_v8  ;;  %v168_v10 = vsel %vm167_vm2, %v163_v8, 0.0 }
  0x50   : > { %v169_v11 = vrot.slane %v168_v10, 4 }
  0x51   : > { %v175_v12 = vsel %vm167_vm2, %v165_v9, 0.0 }
  0x52   : > { %v170_v13 = vadd.f32 %v169_v11, %v168_v10  ;;  %v176_v14 = vrot.slane %v175_v12, 4 }
  0x54   : > { %v171_v15 = vrot.slane %v170_v13, 2  ;;  %v177_v16 = vadd.f32 %v176_v14, %v175_v12 }
  0x56   : > { %v172_v17 = vadd.f32 %v171_v15, %v170_v13  ;;  %v178_v18 = vrot.slane %v177_v16, 2 }
  0x58   : > { %v173_v19 = vrot.slane %v172_v17, 1  ;;  %v179_v20 = vadd.f32 %v178_v18, %v177_v16 }
  0x5a   : > { %v174_v21 = vadd.f32 %v173_v19, %v172_v17  ;;  %v180_v22 = vrot.slane %v179_v20, 1 }
  0x5c   : > { %v181_v23 = vadd.f32 %v180_v22, %v179_v20  ;;  %v182_v24 = vadd.f32 1e-06, %v174_v21 }
  0x5e   : > { %v183_v25 = vadd.f32 1e-06, %v181_v23  ;;  %374 = vrcp.f32 %v182_v24 }
  0x60   : > { %376 = vrcp.f32 %v183_v25 }
  0x68   : > { %v375_v26 = vpop.eup %374 }
  0x6a   : > { %v377_v27 = vpop.eup %376 }
  0x6b   : > { %v188_v28 = vcombine.low %v375_v26, %v377_v27 }
  0x6d   : > { %v190_v29 = vmul.f32 %v188_v28, %v163_v8 }
  0x6f   : > { %191 = vst [vmem:[%s150_s18] sm:$0xff] %v190_v29 }
  0x70   : > { %421 = shalt.err (!%p418_p6)
}
  0x71   : > { %s422_s15 = scalar_lea.hbm %s633_s3, 128  ;;  %s426_s22 = scalar_lea.hbm %s681_s1, 256 }
  0x72   : > { %p423_p4 = scmp.ne.s32.totalorder %s633_s3, %s422_s15  ;;  %p427_p1 = scmp.lt.u32.totalorder %s633_s3, %s681_s1 }
  0x73   : > { %p428_p2 = scmp.lt.u32.totalorder %s426_s22, %s422_s15  ;;  %p430_p8 = scmp.lt.u32.totalorder %s422_s15, %s633_s3 }
  0x74   : > { %p424_p10 = pnand %p423_p4, %p690_p9 }
  0x75   : > { %p429_p5 = por %p428_p2, %p427_p1 }
  0x76   : > { %p425_p12 = pneg %p424_p10 }
  0x77   : > { %p431_p11 = por %p430_p8, %p429_p5 }
  0x79   : > { %p432_p0 = pnand %p431_p11, %p425_p12 }
  0x7b   : > { %435 = shalt.err (!%p432_p0)
}
  0x7c   : > { %312 = dma.vmem_to_hbm [thread:$0]  (%p690_p9), %s628_s27, 128, %s633_s3, %s193_s4  }
  0x7d PF: > { %s221_s25 = sand.u32 1, %s470_s6   ;;  %p691_p7 = scmp.ne.s32.totalorder %s686_s21, 0 }
  0x7e   : > { %p692_p13 = scmp.ge.s32.totalorder %s490_s11, 2  ;;  %s222_s26 = scalar_lea.sflag [#allocation4], %s221_s25 }
  0x80   : > { %p319_p3 = pnand %p692_p13, %p691_p7 }
  0x82   : > { %465 = dma.done.wait (!%p319_p3), %s222_s26, 128  }
  0x83   : > { %467 = vsyncadd (!%p319_p3), %s222_s26, 4294967168  ;;  %s17_s11 = sadd.s32 1, %s490_s11   ;;  %s693_s6 = smov %s474_s7 }
  0x84   : > { %p14_p6 = scmp.ge.s32.totalorder %s17_s11, 4   ;;  %s694_s7 = smov %s478_s8 }
  0x85   : > { %s695_s8 = smov %s560_s20  ;;  %s696_s9 = smov %s486_s10 }
  0x86   : > { %s697_s10 = smov %s699_s14  ;;  %16 = sbr.rel (!%p14_p6) target bundleno = 6 (0x6), region = 69 }
  0x8d   :  { %227 = vsyncpa [#allocation3], 1 }
  0x8e   :  { %229 = vsyncpa [#allocation3 + $0x1], 1 }
  0x8f   :  { %230 = vsyncpa [#allocation4], 1 }
  0x90   :  { %232 = vsyncpa [#allocation4 + $0x1], 1 }

</bundles_post_ra>
